<compile_context>
chip_gen: v5e
topology: v5e:2x2
jax: 0.10.0
libtpu: 0.0.40
codegen_flags: <defaults>
</compile_context>

<pallas_src>
import jax
import jax.numpy as jnp
from jax import lax
from jax.experimental import pallas as pl
from jax.experimental.pallas import tpu as pltpu


def encoder_forward(src, emb_table, w_ih, w_hh, b_ih, b_hh):
    """src: [S, B] int32 token ids. Returns hidden: [1, B, H] float32."""
    S, B = src.shape
    V, E = emb_table.shape
    H = w_hh.shape[-1]

    # ---- one-time parameter layout prep (pure layout plumbing, outside kernel) ----
    # gate-concatenated weights along the lane dim, PyTorch gate order [r, z, n]
    wih_cat = jnp.concatenate([w_ih[0], w_ih[1], w_ih[2]], axis=-1)   # (E, 3H)
    whh_cat = jnp.concatenate([w_hh[0], w_hh[1], w_hh[2]], axis=-1)   # (H, 3H)
    b_ih2 = b_ih.reshape(3, H)
    b_hh2 = b_hh.reshape(3, H)
    # fold b_hh into the r/z biases; b_hh_n must stay separate (multiplied by r)
    b_fused = jnp.concatenate(
        [b_ih2[0] + b_hh2[0], b_ih2[1] + b_hh2[1], b_ih2[2]], axis=-1)[None, :]  # (1, 3H)
    b_hn = b_hh2[2][None, :]                                                     # (1, H)

    # pad vocab rows to a sublane multiple so the one-hot matmul operand is tidy
    V_pad = ((V + 7) // 8) * 8
    emb_padded = jnp.pad(emb_table, ((0, V_pad - V), (0, 0)))

    # time-major flattened ids: row t*B + b
    src_flat = src.reshape(S * B, 1).astype(jnp.int32)

    def kernel(src_ref, emb_ref, wih_ref, whh_ref, bfused_ref, bhn_ref,
               h_out_ref, i_scr):
        # ---------- setup phase: time-independent, off the serial path ----------
        ids = src_ref[...]                                            # (S*B, 1) int32
        vocab = lax.broadcasted_iota(jnp.int32, (S * B, V_pad), 1)
        onehot = (ids == vocab).astype(jnp.float32)                   # (S*B, V_pad)
        # fused embedding gather for ALL time steps: one MXU matmul (exact one-hot)
        x_all = jnp.dot(onehot, emb_ref[...],
                        preferred_element_type=jnp.float32)            # (S*B, E)
        # hoisted input projection for ALL time steps, biases folded in
        i_all = (jnp.dot(x_all, wih_ref[...],
                         preferred_element_type=jnp.float32)
                 + bfused_ref[...])                                     # (S*B, 3H)
        # stage per-time-step slabs into VMEM scratch (static prologue writes)
        for t in range(S):
            i_scr[t] = i_all[t * B:(t + 1) * B, :]

        whh = whh_ref[...]      # (H, 3H) hoisted load, resident across the loop
        b_hn_v = bhn_ref[...]   # (1, H)  hoisted load

        # ---------- serial recurrence: one matmul + gate math per step ----------
        def step(t, h):
            i_t = i_scr[t]                                               # (B, 3H)
            g = jnp.dot(h, whh, preferred_element_type=jnp.float32)      # (B, 3H)
            rz = jax.nn.sigmoid(i_t[:, :2 * H] + g[:, :2 * H])           # (B, 2H)
            r = rz[:, :H]
            z = rz[:, H:]
            n = jnp.tanh(i_t[:, 2 * H:] + r * (g[:, 2 * H:] + b_hn_v))   # (B, H)
            return (1.0 - z) * n + z * h

        h0 = jnp.zeros((B, H), jnp.float32)
        h_last = lax.fori_loop(0, S, step, h0,
                               unroll=True if S <= 16 else 8)
        h_out_ref[0] = h_last.astype(h_out_ref.dtype)

    vmem = pltpu.MemorySpace.VMEM
    hidden = pl.pallas_call(
        kernel,
        out_shape=jax.ShapeDtypeStruct((1, B, H), jnp.float32),
        in_specs=[pl.BlockSpec(memory_space=vmem)] * 6,
        out_specs=pl.BlockSpec(memory_space=vmem),
        scratch_shapes=[pltpu.VMEM((S, B, 3 * H), jnp.float32)],
    )(src_flat, emb_padded, wih_cat, whh_cat, b_fused, b_hn)
    return hidden


def encoder_reference(src, emb_table, w_ih, w_hh, b_ih, b_hh):
    """Pure-JAX reference (PyTorch GRU semantics, gate order r, z, n)."""
    embedded = jnp.take(emb_table, src, axis=0)  # [S, B, E]
    B = embedded.shape[1]
    H = w_hh.shape[-1]
    h0 = jnp.zeros((B, H), jnp.float32)

    def step(h, x):
        i_r = x @ w_ih[0] + b_ih[0]
        i_z = x @ w_ih[1] + b_ih[1]
        i_n = x @ w_ih[2] + b_ih[2]
        h_r = h @ w_hh[0] + b_hh[0]
        h_z = h @ w_hh[1] + b_hh[1]
        h_n = h @ w_hh[2] + b_hh[2]
        r = jax.nn.sigmoid(i_r + h_r)
        z = jax.nn.sigmoid(i_z + h_z)
        n = jnp.tanh(i_n + r * h_n)
        h_new = (1.0 - z) * n + z * h
        return h_new, None

    h_last, _ = lax.scan(step, h0, embedded)
    return h_last[None]  # [1, B, H]


if __name__ == "__main__":
    # Small, deterministic config consistent with Encoder(input_dim, emb_dim, hid_dim, dropout)
    INPUT_DIM = 50   # vocab size
    EMB_DIM = 32
    HID_DIM = 32
    SEQ_LEN = 8
    BATCH = 4

    key = jax.random.PRNGKey(0)
    k_emb, k_wih, k_whh, k_bih, k_bhh, k_src = jax.random.split(key, 6)

    # Deterministic synthetic parameters (shapes match nn.Embedding / nn.GRU(emb, hid))
    emb_table = jax.random.normal(k_emb, (INPUT_DIM, EMB_DIM), jnp.float32) * 0.1
    # GRU params stored gate-major, pre-transposed for x @ W:  (3, in, H)
    w_ih = jax.random.normal(k_wih, (3, EMB_DIM, HID_DIM), jnp.float32) * 0.1
    w_hh = jax.random.normal(k_whh, (3, HID_DIM, HID_DIM), jnp.float32) * 0.1
    b_ih = jax.random.normal(k_bih, (3, 1, HID_DIM), jnp.float32) * 0.1
    b_hh = jax.random.normal(k_bhh, (3, 1, HID_DIM), jnp.float32) * 0.1

    src = jax.random.randint(k_src, (SEQ_LEN, BATCH), 0, INPUT_DIM, jnp.int32)

    hidden = encoder_forward(src, emb_table, w_ih, w_hh, b_ih, b_hh)
    hidden = jax.block_until_ready(hidden)

    ref = encoder_reference(src, emb_table, w_ih, w_hh, b_ih, b_hh)
    assert hidden.shape == (1, BATCH, HID_DIM), hidden.shape
    assert jnp.allclose(hidden, ref, atol=2e-5, rtol=2e-5), "mismatch vs reference"

    print("KERNEL_OK")
</pallas_src>

<mosaic_0001>
module attributes {stable_mosaic.version = 11 : i64} {
  func.func @kernel(%arg0: memref<32x1xi32, #tpu.memory_space<vmem>>, %arg1: memref<56x32xf32, #tpu.memory_space<vmem>>, %arg2: memref<32x96xf32, #tpu.memory_space<vmem>>, %arg3: memref<32x96xf32, #tpu.memory_space<vmem>>, %arg4: memref<1x96xf32, #tpu.memory_space<vmem>>, %arg5: memref<1x32xf32, #tpu.memory_space<vmem>>, %arg6: memref<1x4x32xf32, #tpu.memory_space<vmem>>, %arg7: memref<8x4x96xf32, #tpu.memory_space<vmem>>) attributes {dimension_semantics = [], scalar_prefetch = 0 : i64, scratch_operands = 1 : i64, tpu.core_type = #tpu.core_type<tc>} {
    %c0 = arith.constant 0 : index
    %c0_0 = arith.constant 0 : index
    %0 = vector.load %arg0[%c0, %c0_0] : memref<32x1xi32, #tpu.memory_space<vmem>>, vector<32x1xi32>
    %1 = tpu.iota {dimensions = array<i32: 1>} : vector<32x56xi32>
    %2 = vector.broadcast %0 : vector<32x1xi32> to vector<32x56xi32>
    %3 = arith.cmpi eq, %2, %1 : vector<32x56xi32>
    %4 = arith.extui %3 : vector<32x56xi1> to vector<32x56xi32>
    %5 = arith.sitofp %4 : vector<32x56xi32> to vector<32x56xf32>
    %c0_1 = arith.constant 0 : index
    %c0_2 = arith.constant 0 : index
    %6 = vector.load %arg1[%c0_1, %c0_2] : memref<56x32xf32, #tpu.memory_space<vmem>>, vector<56x32xf32>
    %cst = arith.constant dense<0.000000e+00> : vector<32x32xf32>
    %7 = tpu.matmul %5, %6, %cst {dimension_numbers = #tpu.dot_dimension_numbers<[1], [0], [0], [1], [0, 0, 1, 1], [], []>} : vector<32x56xf32>, vector<56x32xf32>, vector<32x32xf32> -> vector<32x32xf32>
    %c0_3 = arith.constant 0 : index
    %c0_4 = arith.constant 0 : index
    %8 = vector.load %arg2[%c0_3, %c0_4] : memref<32x96xf32, #tpu.memory_space<vmem>>, vector<32x96xf32>
    %cst_5 = arith.constant dense<0.000000e+00> : vector<32x96xf32>
    %9 = tpu.matmul %7, %8, %cst_5 {dimension_numbers = #tpu.dot_dimension_numbers<[1], [0], [0], [1], [0, 0, 1, 1], [], []>} : vector<32x32xf32>, vector<32x96xf32>, vector<32x96xf32> -> vector<32x96xf32>
    %c0_6 = arith.constant 0 : index
    %c0_7 = arith.constant 0 : index
    %10 = vector.load %arg4[%c0_6, %c0_7] : memref<1x96xf32, #tpu.memory_space<vmem>>, vector<1x96xf32>
    %11 = vector.broadcast %10 : vector<1x96xf32> to vector<32x96xf32>
    %12 = arith.addf %9, %11 : vector<32x96xf32>
    %13 = vector.extract_strided_slice %12 {offsets = [0, 0], sizes = [4, 96], strides = [1, 1]} : vector<32x96xf32> to vector<4x96xf32>
    %c0_8 = arith.constant 0 : index
    %c0_9 = arith.constant 0 : index
    %c0_10 = arith.constant 0 : index
    %14 = vector.load %arg7[%c0_8, %c0_9, %c0_10] : memref<8x4x96xf32, #tpu.memory_space<vmem>>, vector<1x4x96xf32>
    %15 = vector.shape_cast %14 : vector<1x4x96xf32> to vector<4x96xf32>
    %16 = vector.shape_cast %13 : vector<4x96xf32> to vector<1x4x96xf32>
    tpu.vector_store %arg7[%c0_8, %c0_9, %c0_10], %16 {strides = array<i32>} : memref<8x4x96xf32, #tpu.memory_space<vmem>>, vector<1x4x96xf32>,
    %17 = vector.extract_strided_slice %12 {offsets = [4, 0], sizes = [4, 96], strides = [1, 1]} : vector<32x96xf32> to vector<4x96xf32>
    %c1 = arith.constant 1 : index
    %c0_11 = arith.constant 0 : index
    %c0_12 = arith.constant 0 : index
    %18 = vector.load %arg7[%c1, %c0_11, %c0_12] : memref<8x4x96xf32, #tpu.memory_space<vmem>>, vector<1x4x96xf32>
    %19 = vector.shape_cast %18 : vector<1x4x96xf32> to vector<4x96xf32>
    %20 = vector.shape_cast %17 : vector<4x96xf32> to vector<1x4x96xf32>
    tpu.vector_store %arg7[%c1, %c0_11, %c0_12], %20 {strides = array<i32>} : memref<8x4x96xf32, #tpu.memory_space<vmem>>, vector<1x4x96xf32>,
    %21 = vector.extract_strided_slice %12 {offsets = [8, 0], sizes = [4, 96], strides = [1, 1]} : vector<32x96xf32> to vector<4x96xf32>
    %c2 = arith.constant 2 : index
    %c0_13 = arith.constant 0 : index
    %c0_14 = arith.constant 0 : index
    %22 = vector.load %arg7[%c2, %c0_13, %c0_14] : memref<8x4x96xf32, #tpu.memory_space<vmem>>, vector<1x4x96xf32>
    %23 = vector.shape_cast %22 : vector<1x4x96xf32> to vector<4x96xf32>
    %24 = vector.shape_cast %21 : vector<4x96xf32> to vector<1x4x96xf32>
    tpu.vector_store %arg7[%c2, %c0_13, %c0_14], %24 {strides = array<i32>} : memref<8x4x96xf32, #tpu.memory_space<vmem>>, vector<1x4x96xf32>,
    %25 = vector.extract_strided_slice %12 {offsets = [12, 0], sizes = [4, 96], strides = [1, 1]} : vector<32x96xf32> to vector<4x96xf32>
    %c3 = arith.constant 3 : index
    %c0_15 = arith.constant 0 : index
    %c0_16 = arith.constant 0 : index
    %26 = vector.load %arg7[%c3, %c0_15, %c0_16] : memref<8x4x96xf32, #tpu.memory_space<vmem>>, vector<1x4x96xf32>
    %27 = vector.shape_cast %26 : vector<1x4x96xf32> to vector<4x96xf32>
    %28 = vector.shape_cast %25 : vector<4x96xf32> to vector<1x4x96xf32>
    tpu.vector_store %arg7[%c3, %c0_15, %c0_16], %28 {strides = array<i32>} : memref<8x4x96xf32, #tpu.memory_space<vmem>>, vector<1x4x96xf32>,
    %29 = vector.extract_strided_slice %12 {offsets = [16, 0], sizes = [4, 96], strides = [1, 1]} : vector<32x96xf32> to vector<4x96xf32>
    %c4 = arith.constant 4 : index
    %c0_17 = arith.constant 0 : index
    %c0_18 = arith.constant 0 : index
    %30 = vector.load %arg7[%c4, %c0_17, %c0_18] : memref<8x4x96xf32, #tpu.memory_space<vmem>>, vector<1x4x96xf32>
    %31 = vector.shape_cast %30 : vector<1x4x96xf32> to vector<4x96xf32>
    %32 = vector.shape_cast %29 : vector<4x96xf32> to vector<1x4x96xf32>
    tpu.vector_store %arg7[%c4, %c0_17, %c0_18], %32 {strides = array<i32>} : memref<8x4x96xf32, #tpu.memory_space<vmem>>, vector<1x4x96xf32>,
    %33 = vector.extract_strided_slice %12 {offsets = [20, 0], sizes = [4, 96], strides = [1, 1]} : vector<32x96xf32> to vector<4x96xf32>
    %c5 = arith.constant 5 : index
    %c0_19 = arith.constant 0 : index
    %c0_20 = arith.constant 0 : index
    %34 = vector.load %arg7[%c5, %c0_19, %c0_20] : memref<8x4x96xf32, #tpu.memory_space<vmem>>, vector<1x4x96xf32>
    %35 = vector.shape_cast %34 : vector<1x4x96xf32> to vector<4x96xf32>
    %36 = vector.shape_cast %33 : vector<4x96xf32> to vector<1x4x96xf32>
    tpu.vector_store %arg7[%c5, %c0_19, %c0_20], %36 {strides = array<i32>} : memref<8x4x96xf32, #tpu.memory_space<vmem>>, vector<1x4x96xf32>,
    %37 = vector.extract_strided_slice %12 {offsets = [24, 0], sizes = [4, 96], strides = [1, 1]} : vector<32x96xf32> to vector<4x96xf32>
    %c6 = arith.constant 6 : index
    %c0_21 = arith.constant 0 : index
    %c0_22 = arith.constant 0 : index
    %38 = vector.load %arg7[%c6, %c0_21, %c0_22] : memref<8x4x96xf32, #tpu.memory_space<vmem>>, vector<1x4x96xf32>
    %39 = vector.shape_cast %38 : vector<1x4x96xf32> to vector<4x96xf32>
    %40 = vector.shape_cast %37 : vector<4x96xf32> to vector<1x4x96xf32>
    tpu.vector_store %arg7[%c6, %c0_21, %c0_22], %40 {strides = array<i32>} : memref<8x4x96xf32, #tpu.memory_space<vmem>>, vector<1x4x96xf32>,
    %41 = vector.extract_strided_slice %12 {offsets = [28, 0], sizes = [4, 96], strides = [1, 1]} : vector<32x96xf32> to vector<4x96xf32>
    %c7 = arith.constant 7 : index
    %c0_23 = arith.constant 0 : index
    %c0_24 = arith.constant 0 : index
    %42 = vector.load %arg7[%c7, %c0_23, %c0_24] : memref<8x4x96xf32, #tpu.memory_space<vmem>>, vector<1x4x96xf32>
    %43 = vector.shape_cast %42 : vector<1x4x96xf32> to vector<4x96xf32>
    %44 = vector.shape_cast %41 : vector<4x96xf32> to vector<1x4x96xf32>
    tpu.vector_store %arg7[%c7, %c0_23, %c0_24], %44 {strides = array<i32>} : memref<8x4x96xf32, #tpu.memory_space<vmem>>, vector<1x4x96xf32>,
    %c0_25 = arith.constant 0 : index
    %c0_26 = arith.constant 0 : index
    %45 = vector.load %arg3[%c0_25, %c0_26] : memref<32x96xf32, #tpu.memory_space<vmem>>, vector<32x96xf32>
    %c0_27 = arith.constant 0 : index
    %c0_28 = arith.constant 0 : index
    %46 = vector.load %arg5[%c0_27, %c0_28] : memref<1x32xf32, #tpu.memory_space<vmem>>, vector<1x32xf32>
    %cst_29 = arith.constant 0.000000e+00 : f32
    %47 = vector.broadcast %cst_29 : f32 to vector<4x32xf32>
    %c0_i32 = arith.constant 0 : i32
    %48 = arith.index_cast %c0_i32 : i32 to index
    %c0_30 = arith.constant 0 : index
    %c0_31 = arith.constant 0 : index
    %49 = vector.load %arg7[%48, %c0_30, %c0_31] : memref<8x4x96xf32, #tpu.memory_space<vmem>>, vector<1x4x96xf32>
    %50 = vector.shape_cast %49 : vector<1x4x96xf32> to vector<4x96xf32>
    %cst_32 = arith.constant dense<0.000000e+00> : vector<4x96xf32>
    %51 = tpu.matmul %47, %45, %cst_32 {dimension_numbers = #tpu.dot_dimension_numbers<[1], [0], [0], [1], [0, 0, 1, 1], [], []>} : vector<4x32xf32>, vector<32x96xf32>, vector<4x96xf32> -> vector<4x96xf32>
    %52 = vector.extract_strided_slice %50 {offsets = [0, 0], sizes = [4, 64], strides = [1, 1]} : vector<4x96xf32> to vector<4x64xf32>
    %53 = vector.extract_strided_slice %51 {offsets = [0, 0], sizes = [4, 64], strides = [1, 1]} : vector<4x96xf32> to vector<4x64xf32>
    %54 = arith.addf %52, %53 : vector<4x64xf32>
    %55 = arith.negf %54 : vector<4x64xf32>
    %56 = math.exp %55 : vector<4x64xf32>
    %cst_33 = arith.constant 1.000000e+00 : f32
    %57 = vector.broadcast %cst_33 : f32 to vector<4x64xf32>
    %58 = arith.addf %57, %56 : vector<4x64xf32>
    %59 = arith.divf %57, %58 : vector<4x64xf32>
    %60 = vector.extract_strided_slice %59 {offsets = [0, 0], sizes = [4, 32], strides = [1, 1]} : vector<4x64xf32> to vector<4x32xf32>
    %61 = vector.extract_strided_slice %59 {offsets = [0, 32], sizes = [4, 32], strides = [1, 1]} : vector<4x64xf32> to vector<4x32xf32>
    %62 = vector.extract_strided_slice %50 {offsets = [0, 64], sizes = [4, 32], strides = [1, 1]} : vector<4x96xf32> to vector<4x32xf32>
    %63 = vector.extract_strided_slice %51 {offsets = [0, 64], sizes = [4, 32], strides = [1, 1]} : vector<4x96xf32> to vector<4x32xf32>
    %64 = vector.broadcast %46 : vector<1x32xf32> to vector<4x32xf32>
    %65 = arith.addf %63, %64 : vector<4x32xf32>
    %66 = arith.mulf %60, %65 : vector<4x32xf32>
    %67 = arith.addf %62, %66 : vector<4x32xf32>
    %68 = math.tanh %67 : vector<4x32xf32>
    %cst_34 = arith.constant 1.000000e+00 : f32
    %69 = vector.broadcast %cst_34 : f32 to vector<4x32xf32>
    %70 = arith.subf %69, %61 : vector<4x32xf32>
    %71 = arith.mulf %70, %68 : vector<4x32xf32>
    %72 = arith.mulf %61, %47 : vector<4x32xf32>
    %73 = arith.addf %71, %72 : vector<4x32xf32>
    %c1_i32 = arith.constant 1 : i32
    %74 = arith.index_cast %c1_i32 : i32 to index
    %c0_35 = arith.constant 0 : index
    %c0_36 = arith.constant 0 : index
    %75 = vector.load %arg7[%74, %c0_35, %c0_36] : memref<8x4x96xf32, #tpu.memory_space<vmem>>, vector<1x4x96xf32>
    %76 = vector.shape_cast %75 : vector<1x4x96xf32> to vector<4x96xf32>
    %cst_37 = arith.constant dense<0.000000e+00> : vector<4x96xf32>
    %77 = tpu.matmul %73, %45, %cst_37 {dimension_numbers = #tpu.dot_dimension_numbers<[1], [0], [0], [1], [0, 0, 1, 1], [], []>} : vector<4x32xf32>, vector<32x96xf32>, vector<4x96xf32> -> vector<4x96xf32>
    %78 = vector.extract_strided_slice %76 {offsets = [0, 0], sizes = [4, 64], strides = [1, 1]} : vector<4x96xf32> to vector<4x64xf32>
    %79 = vector.extract_strided_slice %77 {offsets = [0, 0], sizes = [4, 64], strides = [1, 1]} : vector<4x96xf32> to vector<4x64xf32>
    %80 = arith.addf %78, %79 : vector<4x64xf32>
    %81 = arith.negf %80 : vector<4x64xf32>
    %82 = math.exp %81 : vector<4x64xf32>
    %cst_38 = arith.constant 1.000000e+00 : f32
    %83 = vector.broadcast %cst_38 : f32 to vector<4x64xf32>
    %84 = arith.addf %83, %82 : vector<4x64xf32>
    %85 = arith.divf %83, %84 : vector<4x64xf32>
    %86 = vector.extract_strided_slice %85 {offsets = [0, 0], sizes = [4, 32], strides = [1, 1]} : vector<4x64xf32> to vector<4x32xf32>
    %87 = vector.extract_strided_slice %85 {offsets = [0, 32], sizes = [4, 32], strides = [1, 1]} : vector<4x64xf32> to vector<4x32xf32>
    %88 = vector.extract_strided_slice %76 {offsets = [0, 64], sizes = [4, 32], strides = [1, 1]} : vector<4x96xf32> to vector<4x32xf32>
    %89 = vector.extract_strided_slice %77 {offsets = [0, 64], sizes = [4, 32], strides = [1, 1]} : vector<4x96xf32> to vector<4x32xf32>
    %90 = vector.broadcast %46 : vector<1x32xf32> to vector<4x32xf32>
    %91 = arith.addf %89, %90 : vector<4x32xf32>
    %92 = arith.mulf %86, %91 : vector<4x32xf32>
    %93 = arith.addf %88, %92 : vector<4x32xf32>
    %94 = math.tanh %93 : vector<4x32xf32>
    %cst_39 = arith.constant 1.000000e+00 : f32
    %95 = vector.broadcast %cst_39 : f32 to vector<4x32xf32>
    %96 = arith.subf %95, %87 : vector<4x32xf32>
    %97 = arith.mulf %96, %94 : vector<4x32xf32>
    %98 = arith.mulf %87, %73 : vector<4x32xf32>
    %99 = arith.addf %97, %98 : vector<4x32xf32>
    %c2_i32 = arith.constant 2 : i32
    %100 = arith.index_cast %c2_i32 : i32 to index
    %c0_40 = arith.constant 0 : index
    %c0_41 = arith.constant 0 : index
    %101 = vector.load %arg7[%100, %c0_40, %c0_41] : memref<8x4x96xf32, #tpu.memory_space<vmem>>, vector<1x4x96xf32>
    %102 = vector.shape_cast %101 : vector<1x4x96xf32> to vector<4x96xf32>
    %cst_42 = arith.constant dense<0.000000e+00> : vector<4x96xf32>
    %103 = tpu.matmul %99, %45, %cst_42 {dimension_numbers = #tpu.dot_dimension_numbers<[1], [0], [0], [1], [0, 0, 1, 1], [], []>} : vector<4x32xf32>, vector<32x96xf32>, vector<4x96xf32> -> vector<4x96xf32>
    %104 = vector.extract_strided_slice %102 {offsets = [0, 0], sizes = [4, 64], strides = [1, 1]} : vector<4x96xf32> to vector<4x64xf32>
    %105 = vector.extract_strided_slice %103 {offsets = [0, 0], sizes = [4, 64], strides = [1, 1]} : vector<4x96xf32> to vector<4x64xf32>
    %106 = arith.addf %104, %105 : vector<4x64xf32>
    %107 = arith.negf %106 : vector<4x64xf32>
    %108 = math.exp %107 : vector<4x64xf32>
    %cst_43 = arith.constant 1.000000e+00 : f32
    %109 = vector.broadcast %cst_43 : f32 to vector<4x64xf32>
    %110 = arith.addf %109, %108 : vector<4x64xf32>
    %111 = arith.divf %109, %110 : vector<4x64xf32>
    %112 = vector.extract_strided_slice %111 {offsets = [0, 0], sizes = [4, 32], strides = [1, 1]} : vector<4x64xf32> to vector<4x32xf32>
    %113 = vector.extract_strided_slice %111 {offsets = [0, 32], sizes = [4, 32], strides = [1, 1]} : vector<4x64xf32> to vector<4x32xf32>
    %114 = vector.extract_strided_slice %102 {offsets = [0, 64], sizes = [4, 32], strides = [1, 1]} : vector<4x96xf32> to vector<4x32xf32>
    %115 = vector.extract_strided_slice %103 {offsets = [0, 64], sizes = [4, 32], strides = [1, 1]} : vector<4x96xf32> to vector<4x32xf32>
    %116 = vector.broadcast %46 : vector<1x32xf32> to vector<4x32xf32>
    %117 = arith.addf %115, %116 : vector<4x32xf32>
    %118 = arith.mulf %112, %117 : vector<4x32xf32>
    %119 = arith.addf %114, %118 : vector<4x32xf32>
    %120 = math.tanh %119 : vector<4x32xf32>
    %cst_44 = arith.constant 1.000000e+00 : f32
    %121 = vector.broadcast %cst_44 : f32 to vector<4x32xf32>
    %122 = arith.subf %121, %113 : vector<4x32xf32>
    %123 = arith.mulf %122, %120 : vector<4x32xf32>
    %124 = arith.mulf %113, %99 : vector<4x32xf32>
    %125 = arith.addf %123, %124 : vector<4x32xf32>
    %c3_i32 = arith.constant 3 : i32
    %126 = arith.index_cast %c3_i32 : i32 to index
    %c0_45 = arith.constant 0 : index
    %c0_46 = arith.constant 0 : index
    %127 = vector.load %arg7[%126, %c0_45, %c0_46] : memref<8x4x96xf32, #tpu.memory_space<vmem>>, vector<1x4x96xf32>
    %128 = vector.shape_cast %127 : vector<1x4x96xf32> to vector<4x96xf32>
    %cst_47 = arith.constant dense<0.000000e+00> : vector<4x96xf32>
    %129 = tpu.matmul %125, %45, %cst_47 {dimension_numbers = #tpu.dot_dimension_numbers<[1], [0], [0], [1], [0, 0, 1, 1], [], []>} : vector<4x32xf32>, vector<32x96xf32>, vector<4x96xf32> -> vector<4x96xf32>
    %130 = vector.extract_strided_slice %128 {offsets = [0, 0], sizes = [4, 64], strides = [1, 1]} : vector<4x96xf32> to vector<4x64xf32>
    %131 = vector.extract_strided_slice %129 {offsets = [0, 0], sizes = [4, 64], strides = [1, 1]} : vector<4x96xf32> to vector<4x64xf32>
    %132 = arith.addf %130, %131 : vector<4x64xf32>
    %133 = arith.negf %132 : vector<4x64xf32>
    %134 = math.exp %133 : vector<4x64xf32>
    %cst_48 = arith.constant 1.000000e+00 : f32
    %135 = vector.broadcast %cst_48 : f32 to vector<4x64xf32>
    %136 = arith.addf %135, %134 : vector<4x64xf32>
    %137 = arith.divf %135, %136 : vector<4x64xf32>
    %138 = vector.extract_strided_slice %137 {offsets = [0, 0], sizes = [4, 32], strides = [1, 1]} : vector<4x64xf32> to vector<4x32xf32>
    %139 = vector.extract_strided_slice %137 {offsets = [0, 32], sizes = [4, 32], strides = [1, 1]} : vector<4x64xf32> to vector<4x32xf32>
    %140 = vector.extract_strided_slice %128 {offsets = [0, 64], sizes = [4, 32], strides = [1, 1]} : vector<4x96xf32> to vector<4x32xf32>
    %141 = vector.extract_strided_slice %129 {offsets = [0, 64], sizes = [4, 32], strides = [1, 1]} : vector<4x96xf32> to vector<4x32xf32>
    %142 = vector.broadcast %46 : vector<1x32xf32> to vector<4x32xf32>
    %143 = arith.addf %141, %142 : vector<4x32xf32>
    %144 = arith.mulf %138, %143 : vector<4x32xf32>
    %145 = arith.addf %140, %144 : vector<4x32xf32>
    %146 = math.tanh %145 : vector<4x32xf32>
    %cst_49 = arith.constant 1.000000e+00 : f32
    %147 = vector.broadcast %cst_49 : f32 to vector<4x32xf32>
    %148 = arith.subf %147, %139 : vector<4x32xf32>
    %149 = arith.mulf %148, %146 : vector<4x32xf32>
    %150 = arith.mulf %139, %125 : vector<4x32xf32>
    %151 = arith.addf %149, %150 : vector<4x32xf32>
    %c4_i32 = arith.constant 4 : i32
    %152 = arith.index_cast %c4_i32 : i32 to index
    %c0_50 = arith.constant 0 : index
    %c0_51 = arith.constant 0 : index
    %153 = vector.load %arg7[%152, %c0_50, %c0_51] : memref<8x4x96xf32, #tpu.memory_space<vmem>>, vector<1x4x96xf32>
    %154 = vector.shape_cast %153 : vector<1x4x96xf32> to vector<4x96xf32>
    %cst_52 = arith.constant dense<0.000000e+00> : vector<4x96xf32>
    %155 = tpu.matmul %151, %45, %cst_52 {dimension_numbers = #tpu.dot_dimension_numbers<[1], [0], [0], [1], [0, 0, 1, 1], [], []>} : vector<4x32xf32>, vector<32x96xf32>, vector<4x96xf32> -> vector<4x96xf32>
    %156 = vector.extract_strided_slice %154 {offsets = [0, 0], sizes = [4, 64], strides = [1, 1]} : vector<4x96xf32> to vector<4x64xf32>
    %157 = vector.extract_strided_slice %155 {offsets = [0, 0], sizes = [4, 64], strides = [1, 1]} : vector<4x96xf32> to vector<4x64xf32>
    %158 = arith.addf %156, %157 : vector<4x64xf32>
    %159 = arith.negf %158 : vector<4x64xf32>
    %160 = math.exp %159 : vector<4x64xf32>
    %cst_53 = arith.constant 1.000000e+00 : f32
    %161 = vector.broadcast %cst_53 : f32 to vector<4x64xf32>
    %162 = arith.addf %161, %160 : vector<4x64xf32>
    %163 = arith.divf %161, %162 : vector<4x64xf32>
    %164 = vector.extract_strided_slice %163 {offsets = [0, 0], sizes = [4, 32], strides = [1, 1]} : vector<4x64xf32> to vector<4x32xf32>
    %165 = vector.extract_strided_slice %163 {offsets = [0, 32], sizes = [4, 32], strides = [1, 1]} : vector<4x64xf32> to vector<4x32xf32>
    %166 = vector.extract_strided_slice %154 {offsets = [0, 64], sizes = [4, 32], strides = [1, 1]} : vector<4x96xf32> to vector<4x32xf32>
    %167 = vector.extract_strided_slice %155 {offsets = [0, 64], sizes = [4, 32], strides = [1, 1]} : vector<4x96xf32> to vector<4x32xf32>
    %168 = vector.broadcast %46 : vector<1x32xf32> to vector<4x32xf32>
    %169 = arith.addf %167, %168 : vector<4x32xf32>
    %170 = arith.mulf %164, %169 : vector<4x32xf32>
    %171 = arith.addf %166, %170 : vector<4x32xf32>
    %172 = math.tanh %171 : vector<4x32xf32>
    %cst_54 = arith.constant 1.000000e+00 : f32
    %173 = vector.broadcast %cst_54 : f32 to vector<4x32xf32>
    %174 = arith.subf %173, %165 : vector<4x32xf32>
    %175 = arith.mulf %174, %172 : vector<4x32xf32>
    %176 = arith.mulf %165, %151 : vector<4x32xf32>
    %177 = arith.addf %175, %176 : vector<4x32xf32>
    %c5_i32 = arith.constant 5 : i32
    %178 = arith.index_cast %c5_i32 : i32 to index
    %c0_55 = arith.constant 0 : index
    %c0_56 = arith.constant 0 : index
    %179 = vector.load %arg7[%178, %c0_55, %c0_56] : memref<8x4x96xf32, #tpu.memory_space<vmem>>, vector<1x4x96xf32>
    %180 = vector.shape_cast %179 : vector<1x4x96xf32> to vector<4x96xf32>
    %cst_57 = arith.constant dense<0.000000e+00> : vector<4x96xf32>
    %181 = tpu.matmul %177, %45, %cst_57 {dimension_numbers = #tpu.dot_dimension_numbers<[1], [0], [0], [1], [0, 0, 1, 1], [], []>} : vector<4x32xf32>, vector<32x96xf32>, vector<4x96xf32> -> vector<4x96xf32>
    %182 = vector.extract_strided_slice %180 {offsets = [0, 0], sizes = [4, 64], strides = [1, 1]} : vector<4x96xf32> to vector<4x64xf32>
    %183 = vector.extract_strided_slice %181 {offsets = [0, 0], sizes = [4, 64], strides = [1, 1]} : vector<4x96xf32> to vector<4x64xf32>
    %184 = arith.addf %182, %183 : vector<4x64xf32>
    %185 = arith.negf %184 : vector<4x64xf32>
    %186 = math.exp %185 : vector<4x64xf32>
    %cst_58 = arith.constant 1.000000e+00 : f32
    %187 = vector.broadcast %cst_58 : f32 to vector<4x64xf32>
    %188 = arith.addf %187, %186 : vector<4x64xf32>
    %189 = arith.divf %187, %188 : vector<4x64xf32>
    %190 = vector.extract_strided_slice %189 {offsets = [0, 0], sizes = [4, 32], strides = [1, 1]} : vector<4x64xf32> to vector<4x32xf32>
    %191 = vector.extract_strided_slice %189 {offsets = [0, 32], sizes = [4, 32], strides = [1, 1]} : vector<4x64xf32> to vector<4x32xf32>
    %192 = vector.extract_strided_slice %180 {offsets = [0, 64], sizes = [4, 32], strides = [1, 1]} : vector<4x96xf32> to vector<4x32xf32>
    %193 = vector.extract_strided_slice %181 {offsets = [0, 64], sizes = [4, 32], strides = [1, 1]} : vector<4x96xf32> to vector<4x32xf32>
    %194 = vector.broadcast %46 : vector<1x32xf32> to vector<4x32xf32>
    %195 = arith.addf %193, %194 : vector<4x32xf32>
    %196 = arith.mulf %190, %195 : vector<4x32xf32>
    %197 = arith.addf %192, %196 : vector<4x32xf32>
    %198 = math.tanh %197 : vector<4x32xf32>
    %cst_59 = arith.constant 1.000000e+00 : f32
    %199 = vector.broadcast %cst_59 : f32 to vector<4x32xf32>
    %200 = arith.subf %199, %191 : vector<4x32xf32>
    %201 = arith.mulf %200, %198 : vector<4x32xf32>
    %202 = arith.mulf %191, %177 : vector<4x32xf32>
    %203 = arith.addf %201, %202 : vector<4x32xf32>
    %c6_i32 = arith.constant 6 : i32
    %204 = arith.index_cast %c6_i32 : i32 to index
    %c0_60 = arith.constant 0 : index
    %c0_61 = arith.constant 0 : index
    %205 = vector.load %arg7[%204, %c0_60, %c0_61] : memref<8x4x96xf32, #tpu.memory_space<vmem>>, vector<1x4x96xf32>
    %206 = vector.shape_cast %205 : vector<1x4x96xf32> to vector<4x96xf32>
    %cst_62 = arith.constant dense<0.000000e+00> : vector<4x96xf32>
    %207 = tpu.matmul %203, %45, %cst_62 {dimension_numbers = #tpu.dot_dimension_numbers<[1], [0], [0], [1], [0, 0, 1, 1], [], []>} : vector<4x32xf32>, vector<32x96xf32>, vector<4x96xf32> -> vector<4x96xf32>
    %208 = vector.extract_strided_slice %206 {offsets = [0, 0], sizes = [4, 64], strides = [1, 1]} : vector<4x96xf32> to vector<4x64xf32>
    %209 = vector.extract_strided_slice %207 {offsets = [0, 0], sizes = [4, 64], strides = [1, 1]} : vector<4x96xf32> to vector<4x64xf32>
    %210 = arith.addf %208, %209 : vector<4x64xf32>
    %211 = arith.negf %210 : vector<4x64xf32>
    %212 = math.exp %211 : vector<4x64xf32>
    %cst_63 = arith.constant 1.000000e+00 : f32
    %213 = vector.broadcast %cst_63 : f32 to vector<4x64xf32>
    %214 = arith.addf %213, %212 : vector<4x64xf32>
    %215 = arith.divf %213, %214 : vector<4x64xf32>
    %216 = vector.extract_strided_slice %215 {offsets = [0, 0], sizes = [4, 32], strides = [1, 1]} : vector<4x64xf32> to vector<4x32xf32>
    %217 = vector.extract_strided_slice %215 {offsets = [0, 32], sizes = [4, 32], strides = [1, 1]} : vector<4x64xf32> to vector<4x32xf32>
    %218 = vector.extract_strided_slice %206 {offsets = [0, 64], sizes = [4, 32], strides = [1, 1]} : vector<4x96xf32> to vector<4x32xf32>
    %219 = vector.extract_strided_slice %207 {offsets = [0, 64], sizes = [4, 32], strides = [1, 1]} : vector<4x96xf32> to vector<4x32xf32>
    %220 = vector.broadcast %46 : vector<1x32xf32> to vector<4x32xf32>
    %221 = arith.addf %219, %220 : vector<4x32xf32>
    %222 = arith.mulf %216, %221 : vector<4x32xf32>
    %223 = arith.addf %218, %222 : vector<4x32xf32>
    %224 = math.tanh %223 : vector<4x32xf32>
    %cst_64 = arith.constant 1.000000e+00 : f32
    %225 = vector.broadcast %cst_64 : f32 to vector<4x32xf32>
    %226 = arith.subf %225, %217 : vector<4x32xf32>
    %227 = arith.mulf %226, %224 : vector<4x32xf32>
    %228 = arith.mulf %217, %203 : vector<4x32xf32>
    %229 = arith.addf %227, %228 : vector<4x32xf32>
    %c7_i32 = arith.constant 7 : i32
    %230 = arith.index_cast %c7_i32 : i32 to index
    %c0_65 = arith.constant 0 : index
    %c0_66 = arith.constant 0 : index
    %231 = vector.load %arg7[%230, %c0_65, %c0_66] : memref<8x4x96xf32, #tpu.memory_space<vmem>>, vector<1x4x96xf32>
    %232 = vector.shape_cast %231 : vector<1x4x96xf32> to vector<4x96xf32>
    %cst_67 = arith.constant dense<0.000000e+00> : vector<4x96xf32>
    %233 = tpu.matmul %229, %45, %cst_67 {dimension_numbers = #tpu.dot_dimension_numbers<[1], [0], [0], [1], [0, 0, 1, 1], [], []>} : vector<4x32xf32>, vector<32x96xf32>, vector<4x96xf32> -> vector<4x96xf32>
    %234 = vector.extract_strided_slice %232 {offsets = [0, 0], sizes = [4, 64], strides = [1, 1]} : vector<4x96xf32> to vector<4x64xf32>
    %235 = vector.extract_strided_slice %233 {offsets = [0, 0], sizes = [4, 64], strides = [1, 1]} : vector<4x96xf32> to vector<4x64xf32>
    %236 = arith.addf %234, %235 : vector<4x64xf32>
    %237 = arith.negf %236 : vector<4x64xf32>
    %238 = math.exp %237 : vector<4x64xf32>
    %cst_68 = arith.constant 1.000000e+00 : f32
    %239 = vector.broadcast %cst_68 : f32 to vector<4x64xf32>
    %240 = arith.addf %239, %238 : vector<4x64xf32>
    %241 = arith.divf %239, %240 : vector<4x64xf32>
    %242 = vector.extract_strided_slice %241 {offsets = [0, 0], sizes = [4, 32], strides = [1, 1]} : vector<4x64xf32> to vector<4x32xf32>
    %243 = vector.extract_strided_slice %241 {offsets = [0, 32], sizes = [4, 32], strides = [1, 1]} : vector<4x64xf32> to vector<4x32xf32>
    %244 = vector.extract_strided_slice %232 {offsets = [0, 64], sizes = [4, 32], strides = [1, 1]} : vector<4x96xf32> to vector<4x32xf32>
    %245 = vector.extract_strided_slice %233 {offsets = [0, 64], sizes = [4, 32], strides = [1, 1]} : vector<4x96xf32> to vector<4x32xf32>
    %246 = vector.broadcast %46 : vector<1x32xf32> to vector<4x32xf32>
    %247 = arith.addf %245, %246 : vector<4x32xf32>
    %248 = arith.mulf %242, %247 : vector<4x32xf32>
    %249 = arith.addf %244, %248 : vector<4x32xf32>
    %250 = math.tanh %249 : vector<4x32xf32>
    %cst_69 = arith.constant 1.000000e+00 : f32
    %251 = vector.broadcast %cst_69 : f32 to vector<4x32xf32>
    %252 = arith.subf %251, %243 : vector<4x32xf32>
    %253 = arith.mulf %252, %250 : vector<4x32xf32>
    %254 = arith.mulf %243, %229 : vector<4x32xf32>
    %255 = arith.addf %253, %254 : vector<4x32xf32>
    %c8_i32 = arith.constant 8 : i32
    %c0_70 = arith.constant 0 : index
    %c0_71 = arith.constant 0 : index
    %c0_72 = arith.constant 0 : index
    %256 = vector.load %arg6[%c0_70, %c0_71, %c0_72] : memref<1x4x32xf32, #tpu.memory_space<vmem>>, vector<1x4x32xf32>
    %257 = vector.shape_cast %256 : vector<1x4x32xf32> to vector<4x32xf32>
    %258 = vector.shape_cast %255 : vector<4x32xf32> to vector<1x4x32xf32>
    tpu.vector_store %arg6[%c0_70, %c0_71, %c0_72], %258 {strides = array<i32>} : memref<1x4x32xf32, #tpu.memory_space<vmem>>, vector<1x4x32xf32>,
    return
  }
}

</mosaic_0001>

<bundles_post_ra>
// kernel: tpu_custom_call.1
= control target key start
LH: loop header
LB: loop body
LE: loop exit
PB: predicated region body
PF: predicated region fallthrough
CT: control target
= control target key end

     0   :  { %v838_v3 = vmov 0   ;;  %s1067_s0 = inlined_call_operand.vmem [shape: s32[32,1], index: 0, kind: input, shape index: {}]   ;;  %s1068_s1 = inlined_call_operand.vmem [shape: f32[56,32], index: 1, kind: input, shape index: {}]   ;;  %s1069_s2 = inlined_call_operand.vmem [shape: f32[32,96], index: 2, kind: input, shape index: {}]   ;;  %s1070_s3 = inlined_call_operand.vmem [shape: f32[32,96], index: 3, kind: input, shape index: {}]   ;;  %s1071_s4 = inlined_call_operand.vmem [shape: f32[1,96], index: 4, kind: input, shape index: {}]   ;;  %s1072_s5 = inlined_call_operand.vmem [shape: f32[1,32], index: 5, kind: input, shape index: {}]   ;;  %s1073_s6 = inlined_call_operand.hbm [shape: f32[1,4,32], index: 6, kind: output, shape index: {}]  }
   0x1   :  { %v24_v0 = vld [vmem:[%s1067_s0] sm:$0xff]  ;;  %v60_v1 = vld [vmem:[%s1068_s1 + $0x30] sm:$0xff]  ;;  %v59_v2 = vld [vmem:[%s1068_s1 + $0x28] sm:$0xff]  ;;  %760 = vset.pattern.permute.xlu0 %v838_v3  ;;  %761 = vset.pattern.permute.xlu1 %v838_v3 }
   0x2   :  { %83 = vmatpush.msra.mxu0 %v60_v1  ;;  %31 = vperm.xlu0 %760, %v24_v0   ;;  %v58_v4 = vld [vmem:[%s1068_s1 + $0x20] sm:$0xff] }
   0x4   :  { %84 = vmatpush.msra.mxu0 %v59_v2 }
   0x5   :  { %11 = vsyncpa [#allocation4], 0  ;;  %v57_v5 = vld [vmem:[%s1068_s1 + $0x18] sm:$0xff]  ;;  %v56_v6 = vld [vmem:[%s1068_s1 + $0x10] sm:$0xff]  ;;  %s839_s24 = smov 64   ;;  %v840_v17 = vmov 0.0   ;;  %v28_v18 = vlaneseq }
   0x6   :  { %85 = vmatpush.msra.mxu0 %v58_v4  ;;  %v55_v7 = vld [vmem:[%s1068_s1 + $0x8] sm:$0xff]  ;;  %v54_v8 = vld [vmem:[%s1068_s1] sm:$0xff]  ;;  %v905_v9 = vld [vmem:[%s1070_s3 + $0x18] sm:$0xff]  ;;  %vm61_vm0 = vcmask 457728   ;;  %vm111_vm2 = vcmask 261120   ;;  %vm153_vm3 = vcmask 781312  }
   0x7   :  { %v910_v10 = vld [vmem:[%s1070_s3 + $0x10] sm:$0xff]  ;;  %191 = vmatpush.msra.mxu2 %v905_v9  ;;  %v762_v11 = vld [vmem:[%s1072_s5] ss:$0 sm:$0xff]  ;;  %v106_v12 = vld [vmem:[%s1069_s2 + $0x18] sm:$0xff]  ;;  %262 = vmatpush.msra.mxu3 %v905_v9  ;;  %v956_v19 = vand.u32 127, %v28_v18  ;;  %vm156_vm4 = vcmask 785412  }
   0x8   :  { %86 = vmatpush.msra.mxu0 %v57_v5  ;;  %v923_v13 = vld [vmem:[%s1070_s3 + $0x8] sm:$0xff]  ;;  %136 = vmatpush.msra.mxu1 %v106_v12  ;;  %v105_v14 = vld [vmem:[%s1069_s2 + $0x10] sm:$0xff]  ;;  %v936_v16 = vld [vmem:[%s1070_s3] sm:$0xff]  ;;  %s719_s15 = sshll.u32 %s1073_s6, 4  ;;  %s720_s15 = int_to_ptr.hbm [resolvable:$true] %s719_s15 }
   0x9   :  { %192 = vmatpush.msra.mxu2 %v910_v10  ;;  %v104_v15 = vld [vmem:[%s1069_s2 + $0x8] sm:$0xff]  ;;  %263 = vmatpush.msra.mxu3 %v910_v10  ;;  %v103_v22 = vld [vmem:[%s1069_s2] sm:$0xff]  ;;  %s841_s2 = smov 96  }
   0xa   :  { %87 = vmatpush.msra.mxu0 %v56_v6  ;;  %221 = vrot.lane.b32.xlu0 %v762_v11, %s839_s24  ;;  %v972_v27 = vld [vmem:[%s1071_s4] ss:$0 sm:$0xff]  ;;  %v25_v63 = vld [vmem:[%s1067_s0 + $0x8] sm:$0xff] }
   0xb   :  { %137 = vmatpush.msra.mxu1 %v105_v14  ;;  %193 = vmatpush.msra.mxu2 %v923_v13 }
   0xc   :  { %88 = vmatpush.msra.mxu0 %v55_v7  ;;  %264 = vmatpush.msra.mxu3 %v923_v13 }
   0xd   :  { %138 = vmatpush.msra.mxu1 %v104_v15  ;;  %194 = vmatpush.msra.mxu2 %v936_v16 }
   0xe   :  { %89 = vmatpush.msra.mxu0 %v54_v8  ;;  %195 = vmatmul.f32.vlgmr.msra.gmra.mxu2 %v840_v17 }
   0xf   :  { %265 = vmatpush.msra.mxu3 %v936_v16  ;;  %328 = vmatpush.msrb.mxu2 %v905_v9 }
  0x10   :  { %139 = vmatpush.msra.mxu1 %v103_v22 }
  0x11   :  { %394 = vmatpush.msrb.mxu3 %v905_v9  ;;  %329 = vmatpush.msrb.mxu2 %v910_v10 }
  0x13   :  { %395 = vmatpush.msrb.mxu3 %v910_v10  ;;  %330 = vmatpush.msrb.mxu2 %v923_v13 }
  0x15   :  { %396 = vmatpush.msrb.mxu3 %v923_v13  ;;  %331 = vmatpush.msrb.mxu2 %v936_v16 }
  0x17   :  { %397 = vmatpush.msrb.mxu3 %v936_v16  ;;  %460 = vmatpush.msra.mxu2 %v905_v9 }
  0x19   :  { %461 = vmatpush.msra.mxu2 %v910_v10 }
  0x1b   :  { %462 = vmatpush.msra.mxu2 %v923_v13 }
  0x1d   :  { %463 = vmatpush.msra.mxu2 %v936_v16 }
  0x74   :  { %v32_v20 = vpop.permute.xlu0 %31 }
  0x75   :  { %vm42_vm1 = vcmp.eq.s32.totalorder %v32_v20, %v956_v19 }
  0x76   :  { %v728_v21 = vsel %vm42_vm1, 1.0, %v840_v17 }
  0x77   :  { %732 = vmatmul.msk.f32.vlgmr.msra.gmra.mxu0 %vm61_vm0, %v728_v21 }
  0x7c   :  { %v964_v23 = vpop.permute.xlu0 %221 }
  0x91   :  { %v196_v24 = vpop.f32.mrf.mxu2 }
  0x92   :  { %v224_v25 = vadd.f32 %v964_v23, %v196_v24 }
  0x94   :  { %226 = vrot.lane.b32.xlu1 %v224_v25, %s839_s24 }
  0xf4   :  { %v91_v26 = vpop.f32.mrf.mxu0 }
  0xf5   :  { %736 = vmatmul.msk.f32.vlgmr.msra.gmra.mxu1 %vm111_vm2, %v91_v26 }
 0x106   :  { %v227_v43 = vpop.permute.xlu1 %226 }
 0x172   :  { %v141_v28 = vpop.f32.mrf.mxu1 }
 0x173   :  { %v142_v29 = vadd.f32 %v972_v27, %v141_v28 }
 0x175   :  { %154 = vst.msk [vmem:[#allocation2] sm:$0xf] %vm153_vm3, %v142_v29 }
 0x176   :  { %157 = vst.msk [vmem:[#allocation2] sm:$0xf0] %vm156_vm4, %v142_v29 }
 0x17c   :  { %v175_v30 = vld [vmem:[#allocation2] sm:$0xf] }
 0x17d   :  { %v199_v31 = vadd.f32 %v196_v24, %v175_v30  ;;  %v244_v58 = vld [vmem:[#allocation2 + $0x4] sm:$0xf] }
 0x17f   :  { %v740_v32 = vmul.f32 -1.442695, %v199_v31 }
 0x181   :  { %764 = vpow2.f32 %v740_v32 }
 0x187   :  { %v765_v33 = vpop.eup %764 }
 0x188   :  { %v203_v34 = vadd.f32 1.0, %v765_v33 }
 0x18a   :  { %766 = vrcp.f32 %v203_v34  ;;  %v215_v38 = vand.u32 2147483648, %v203_v34  ;;  %v213_v40 = vand.u32 2147483647, %v203_v34  ;;  %vm209_vm6 = vweird.f32 %v203_v34 }
 0x18c   :  { %v216_v42 = vor.u32 1.1754944e-38, %v215_v38  ;;  %vm214_vm8 = vcmp.eq.f32.partialorder %v213_v40, 8.507059e+37 }
 0x190   :  { %v767_v35 = vpop.eup %766 }
 0x191   :  { %v205_v36 = vmul.f32 %v767_v35, %v203_v34  ;;  %vm210_vm5 = vweird.f32 %v767_v35 }
 0x192   :  { %vm211_vm7 = vmor %vm209_vm6, %vm210_vm5 }
 0x193   :  { %v206_v37 = vsub.f32 1.0, %v205_v36 }
 0x195   :  { %v207_v39 = vmul.f32 %v767_v35, %v206_v37 }
 0x197   :  { %v208_v41 = vadd.f32 %v767_v35, %v207_v39 }
 0x199   :  { %v212_v44 = vsel %vm211_vm7, %v767_v35, %v208_v41 }
 0x19a   :  { %v217_v45 = vsel %vm214_vm8, %v216_v42, %v212_v44 }
 0x19b   :  { %v229_v46 = vmul.f32 %v227_v43, %v217_v45  ;;  %v236_v50 = vsub.f32 1.0, %v217_v45  ;;  %v242_v52 = vmul.f32 0.0, %v217_v45 }
 0x19d   :  { %231 = vrot.lane.b32.xlu1 %v229_v46, %s839_s24 }
 0x1a5   :  { %34 = vperm.xlu1 %761, %v25_v63  }
 0x20f   :  { %v232_v47 = vpop.permute.xlu1 %231 }
 0x210   :  { %v234_v48 = vadd.f32 %v232_v47, %v175_v30 }
 0x212   :  { %768 = vtanh.f32 %v234_v48 }
 0x217   :  { %v35_v15 = vpop.permute.xlu1 %34 }
 0x218   :  { %v769_v49 = vpop.eup %768  ;;  %vm43_vm13 = vcmp.eq.s32.totalorder %v35_v15, %v956_v19 }
 0x219   :  { %238 = vrot.lane.b32.xlu2 %v769_v49, %s841_s2  ;;  %v729_v18 = vsel %vm43_vm13, 1.0, %v840_v17 }
 0x21a   :  { %733 = vmatmul.msk.f32.gmra.mxu0 %vm61_vm0, %v729_v18 }
 0x273   :  { %v239_v51 = vpop.permute.xlu2 %238 }
 0x274   :  { %v241_v53 = vmul.f32 %v239_v51, %v236_v50 }
 0x276   :  { %v243_v54 = vadd.f32 %v242_v52, %v241_v53 }
 0x278   :  { %246 = vrot.lane.b32.xlu2 %v243_v54, %s841_s2 }
 0x297   :  { %v94_v24 = vpop.f32.mrf.mxu0 }
 0x298   :  { %737 = vmatmul.msk.f32.gmra.mxu1 %vm111_vm2, %v94_v24 }
 0x2d2   :  { %v247_v55 = vpop.permute.xlu2 %246 }
 0x2d3   :  { %741 = vmatmul.msk.f32.vlgmr.msra.gmra.mxu3 %vm111_vm2, %v247_v55 }
 0x2d4   :  { %526 = vmatpush.msra.mxu3 %v905_v9 }
 0x2d6   :  { %527 = vmatpush.msra.mxu3 %v910_v10 }
 0x2d8   :  { %528 = vmatpush.msra.mxu3 %v923_v13 }
 0x2da   :  { %529 = vmatpush.msra.mxu3 %v936_v16 }
 0x315   :  { %v144_v32 = vpop.f32.mrf.mxu1 }
 0x316   :  { %v145_v33 = vadd.f32 %v972_v27, %v144_v32 }
 0x318   :  { %159 = vst.msk [vmem:[#allocation2 + $0x8] sm:$0xf] %vm153_vm3, %v145_v33 }
 0x319   :  { %161 = vst.msk [vmem:[#allocation2 + $0x8] sm:$0xf0] %vm156_vm4, %v145_v33 }
 0x31f   :  { %v310_v36 = vld [vmem:[#allocation2 + $0x8] sm:$0xf] }
 0x356   :  { %v267_v56 = vpop.f32.mrf.mxu3 }
 0x357   :  { %v290_v57 = vadd.f32 %v267_v56, %v964_v23  ;;  %v270_v59 = vadd.f32 %v267_v56, %v244_v58  ;;  %v26_v56 = vld [vmem:[%s1067_s0 + $0x10] sm:$0xff] }
 0x359   :  { %292 = vrot.lane.b32.xlu0 %v290_v57, %s839_s24  ;;  %v742_v60 = vmul.f32 -1.442695, %v270_v59 }
 0x35b   :  { %770 = vpow2.f32 %v742_v60 }
 0x361   :  { %v771_v61 = vpop.eup %770 }
 0x362   :  { %v274_v62 = vadd.f32 1.0, %v771_v61 }
 0x364   :  { %772 = vrcp.f32 %v274_v62  ;;  %v286_v5 = vand.u32 2147483648, %v274_v62  ;;  %vm280_vm10 = vweird.f32 %v274_v62  ;;  %v284_v6 = vand.u32 2147483647, %v274_v62 }
 0x366   :  { %v287_v8 = vor.u32 1.1754944e-38, %v286_v5  ;;  %vm285_vm12 = vcmp.eq.f32.partialorder %v284_v6, 8.507059e+37 }
 0x36a   :  { %v773_v0 = vpop.eup %772 }
 0x36b   :  { %v276_v1 = vmul.f32 %v773_v0, %v274_v62  ;;  %vm281_vm9 = vweird.f32 %v773_v0 }
 0x36c   :  { %vm282_vm11 = vmor %vm280_vm10, %vm281_vm9 }
 0x36d   :  { %v277_v2 = vsub.f32 1.0, %v276_v1 }
 0x36f   :  { %v278_v3 = vmul.f32 %v773_v0, %v277_v2 }
 0x371   :  { %v279_v4 = vadd.f32 %v773_v0, %v278_v3 }
 0x373   :  { %v283_v7 = vsel %vm282_vm11, %v773_v0, %v279_v4 }
 0x374   :  { %v288_v12 = vsel %vm285_vm12, %v287_v8, %v283_v7 }
 0x375   :  { %v302_v25 = vsub.f32 1.0, %v288_v12  ;;  %v308_v28 = vmul.f32 %v288_v12, %v243_v54 }
 0x3cb   :  { %v293_v11 = vpop.permute.xlu0 %292 }
 0x3cc   :  { %v295_v14 = vmul.f32 %v293_v11, %v288_v12 }
 0x3ce   :  { %297 = vrot.lane.b32.xlu2 %v295_v14, %s839_s24 }
 0x428   :  { %v298_v20 = vpop.permute.xlu2 %297 }
 0x429   :  { %v300_v21 = vadd.f32 %v298_v20, %v244_v58 }
 0x42b   :  { %774 = vtanh.f32 %v300_v21 }
 0x431   :  { %v775_v22 = vpop.eup %774 }
 0x432   :  { %304 = vrot.lane.b32.xlu0 %v775_v22, %s841_s2 }
 0x4a4   :  { %v305_v26 = vpop.permute.xlu0 %304 }
 0x4a5   :  { %v307_v29 = vmul.f32 %v305_v26, %v302_v25 }
 0x4a7   :  { %v309_v30 = vadd.f32 %v308_v28, %v307_v29 }
 0x4a9   :  { %312 = vrot.lane.b32.xlu1 %v309_v30, %s841_s2 }
 0x51b   :  { %v313_v31 = vpop.permute.xlu1 %312 }
 0x51c   :  { %743 = vmatmul.msk.f32.vlgmr.msrb.gmra.mxu2 %vm111_vm2, %v313_v31 }
 0x51d   :  { %592 = vmatpush.msrb.mxu2 %v905_v9 }
 0x51f   :  { %593 = vmatpush.msrb.mxu2 %v910_v10 }
 0x521   :  { %594 = vmatpush.msrb.mxu2 %v923_v13 }
 0x523   :  { %595 = vmatpush.msrb.mxu2 %v936_v16 }
 0x59f   :  { %v333_v34 = vpop.f32.mrf.mxu2 }
 0x5a0   :  { %v356_v35 = vadd.f32 %v333_v34, %v964_v23  ;;  %v336_v37 = vadd.f32 %v333_v34, %v310_v36 }
 0x5a2   :  { %358 = vrot.lane.b32.xlu2 %v356_v35, %s839_s24  ;;  %v744_v38 = vmul.f32 -1.442695, %v336_v37 }
 0x5a4   :  { %776 = vpow2.f32 %v744_v38 }
 0x5aa   :  { %v777_v39 = vpop.eup %776 }
 0x5ab   :  { %v340_v40 = vadd.f32 1.0, %v777_v39 }
 0x5ad   :  { %778 = vrcp.f32 %v340_v40  ;;  %v352_v46 = vand.u32 2147483648, %v340_v40  ;;  %vm346_vm15 = vweird.f32 %v340_v40  ;;  %v350_v47 = vand.u32 2147483647, %v340_v40 }
 0x5af   :  { %v353_v49 = vor.u32 1.1754944e-38, %v352_v46  ;;  %vm351_vm5 = vcmp.eq.f32.partialorder %v350_v47, 8.507059e+37 }
 0x5b3   :  { %v779_v41 = vpop.eup %778 }
 0x5b4   :  { %v342_v42 = vmul.f32 %v779_v41, %v340_v40  ;;  %vm347_vm14 = vweird.f32 %v779_v41 }
 0x5b5   :  { %vm348_vm1 = vmor %vm346_vm15, %vm347_vm14 }
 0x5b6   :  { %v343_v43 = vsub.f32 1.0, %v342_v42 }
 0x5b8   :  { %v344_v44 = vmul.f32 %v779_v41, %v343_v43 }
 0x5ba   :  { %v345_v45 = vadd.f32 %v779_v41, %v344_v44 }
 0x5bc   :  { %v349_v48 = vsel %vm348_vm1, %v779_v41, %v345_v45 }
 0x5bd   :  { %v354_v51 = vsel %vm351_vm5, %v353_v49, %v349_v48 }
 0x5be   :  { %v368_v57 = vsub.f32 1.0, %v354_v51  ;;  %v374_v59 = vmul.f32 %v354_v51, %v309_v30 }
 0x5fc   :  { %v359_v50 = vpop.permute.xlu2 %358 }
 0x5fd   :  { %v361_v52 = vmul.f32 %v359_v50, %v354_v51 }
 0x5ff   :  { %363 = vrot.lane.b32.xlu0 %v361_v52, %s839_s24 }
 0x671   :  { %v364_v53 = vpop.permute.xlu0 %363 }
 0x672   :  { %v366_v54 = vadd.f32 %v364_v53, %v310_v36 }
 0x674   :  { %780 = vtanh.f32 %v366_v54 }
 0x67a   :  { %v781_v55 = vpop.eup %780 }
 0x67b   :  { %370 = vrot.lane.b32.xlu1 %v781_v55, %s841_s2 }
 0x683   :  { %37 = vperm.xlu1 %761, %v26_v56  }
 0x6ed   :  { %v371_v58 = vpop.permute.xlu1 %370 }
 0x6ee   :  { %v373_v60 = vmul.f32 %v371_v58, %v368_v57  ;;  %v27_v58 = vld [vmem:[%s1067_s0 + $0x18] sm:$0xff]  ;;  %s842_s0 = smov [#allocation3]  }
 0x6ef   :  { %s717_s12 = sshll.u32 %s842_s0, 4  ;;  %s718_s12 = int_to_ptr.vmem [resolvable:$true] %s717_s12 }
 0x6f0   :  { %v375_v61 = vadd.f32 %v374_v59, %v373_v60 }
 0x6f2   :  { %378 = vrot.lane.b32.xlu2 %v375_v61, %s841_s2 }
 0x6f5   :  { %v38_v62 = vpop.permute.xlu1 %37 }
 0x6f6   :  { %vm44_vm6 = vcmp.eq.s32.totalorder %v38_v62, %v956_v19 }
 0x6f7   :  { %v730_v63 = vsel %vm44_vm6, 1.0, %v840_v17 }
 0x6f8   :  { %734 = vmatmul.msk.f32.gmra.mxu0 %vm61_vm0, %v730_v63 }
 0x74c   :  { %v379_v0 = vpop.permute.xlu2 %378 }
 0x74d   :  { %745 = vmatmul.msk.f32.vlgmr.msrb.gmra.mxu3 %vm111_vm2, %v379_v0 }
 0x74e   :  { %658 = vmatpush.msrb.mxu3 %v905_v9  ;;  %v376_v9 = vld [vmem:[#allocation2 + $0xc] sm:$0xf] }
 0x750   :  { %659 = vmatpush.msrb.mxu3 %v910_v10 }
 0x752   :  { %660 = vmatpush.msrb.mxu3 %v923_v13 }
 0x754   :  { %661 = vmatpush.msrb.mxu3 %v936_v16 }
 0x775   :  { %v97_v1 = vpop.f32.mrf.mxu0 }
 0x776   :  { %738 = vmatmul.msk.f32.gmra.mxu1 %vm111_vm2, %v97_v1 }
 0x7d0   :  { %v399_v2 = vpop.f32.mrf.mxu3 }
 0x7d1   :  { %v422_v3 = vadd.f32 %v399_v2, %v964_v23  ;;  %v402_v10 = vadd.f32 %v399_v2, %v376_v9 }
 0x7d3   :  { %424 = vrot.lane.b32.xlu0 %v422_v3, %s839_s24  ;;  %v746_v13 = vmul.f32 -1.442695, %v402_v10 }
 0x7d5   :  { %782 = vpow2.f32 %v746_v13 }
 0x7db   :  { %v783_v16 = vpop.eup %782 }
 0x7dc   :  { %v406_v6 = vadd.f32 1.0, %v783_v16 }
 0x7de   :  { %784 = vrcp.f32 %v406_v6  ;;  %v418_v15 = vand.u32 2147483648, %v406_v6  ;;  %vm412_vm8 = vweird.f32 %v406_v6  ;;  %v416_v18 = vand.u32 2147483647, %v406_v6 }
 0x7e0   :  { %v419_v21 = vor.u32 1.1754944e-38, %v418_v15  ;;  %vm417_vm10 = vcmp.eq.f32.partialorder %v416_v18, 8.507059e+37 }
 0x7e4   :  { %v785_v7 = vpop.eup %784 }
 0x7e5   :  { %v408_v8 = vmul.f32 %v785_v7, %v406_v6  ;;  %vm413_vm7 = vweird.f32 %v785_v7 }
 0x7e6   :  { %vm414_vm9 = vmor %vm412_vm8, %vm413_vm7 }
 0x7e7   :  { %v409_v11 = vsub.f32 1.0, %v408_v8 }
 0x7e9   :  { %v410_v12 = vmul.f32 %v785_v7, %v409_v11 }
 0x7eb   :  { %v411_v14 = vadd.f32 %v785_v7, %v410_v12 }
 0x7ed   :  { %v415_v20 = vsel %vm414_vm9, %v785_v7, %v411_v14 }
 0x7ee   :  { %v420_v24 = vsel %vm417_vm10, %v419_v21, %v415_v20 }
 0x7ef   :  { %v434_v30 = vsub.f32 1.0, %v420_v24  ;;  %v440_v32 = vmul.f32 %v420_v24, %v375_v61 }
 0x7f3   :  { %v147_v4 = vpop.f32.mrf.mxu1 }
 0x7f4   :  { %v148_v5 = vadd.f32 %v972_v27, %v147_v4 }
 0x7f6   :  { %163 = vst.msk [vmem:[#allocation2 + $0x10] sm:$0xf] %vm153_vm3, %v148_v5 }
 0x7f7   :  { %165 = vst.msk [vmem:[#allocation2 + $0x10] sm:$0xf0] %vm156_vm4, %v148_v5 }
 0x7fd   :  { %v442_v38 = vld [vmem:[#allocation2 + $0x10] sm:$0xf] }
 0x845   :  { %v425_v22 = vpop.permute.xlu0 %424 }
 0x846   :  { %v427_v25 = vmul.f32 %v425_v22, %v420_v24 }
 0x848   :  { %429 = vrot.lane.b32.xlu2 %v427_v25, %s839_s24 }
 0x8a2   :  { %v430_v26 = vpop.permute.xlu2 %429 }
 0x8a3   :  { %v432_v28 = vadd.f32 %v430_v26, %v376_v9 }
 0x8a5   :  { %786 = vtanh.f32 %v432_v28 }
 0x8ab   :  { %v787_v29 = vpop.eup %786 }
 0x8ac   :  { %436 = vrot.lane.b32.xlu0 %v787_v29, %s841_s2 }
 0x91e   :  { %v437_v31 = vpop.permute.xlu0 %436 }
 0x91f   :  { %v439_v33 = vmul.f32 %v437_v31, %v434_v30 }
 0x921   :  { %v441_v34 = vadd.f32 %v440_v32, %v439_v33 }
 0x923   :  { %444 = vrot.lane.b32.xlu1 %v441_v34, %s841_s2 }
 0x995   :  { %v445_v35 = vpop.permute.xlu1 %444 }
 0x996   :  { %747 = vmatmul.msk.f32.vlgmr.msra.gmra.mxu2 %vm111_vm2, %v445_v35 }
 0xa19   :  { %v465_v36 = vpop.f32.mrf.mxu2 }
 0xa1a   :  { %v488_v37 = vadd.f32 %v465_v36, %v964_v23  ;;  %v468_v39 = vadd.f32 %v465_v36, %v442_v38 }
 0xa1c   :  { %490 = vrot.lane.b32.xlu2 %v488_v37, %s839_s24  ;;  %v748_v40 = vmul.f32 -1.442695, %v468_v39 }
 0xa1e   :  { %788 = vpow2.f32 %v748_v40 }
 0xa24   :  { %v789_v41 = vpop.eup %788 }
 0xa25   :  { %v472_v42 = vadd.f32 1.0, %v789_v41 }
 0xa27   :  { %790 = vrcp.f32 %v472_v42  ;;  %v484_v48 = vand.u32 2147483648, %v472_v42  ;;  %vm478_vm12 = vweird.f32 %v472_v42  ;;  %v482_v49 = vand.u32 2147483647, %v472_v42 }
 0xa29   :  { %v485_v51 = vor.u32 1.1754944e-38, %v484_v48  ;;  %vm483_vm14 = vcmp.eq.f32.partialorder %v482_v49, 8.507059e+37 }
 0xa2d   :  { %v791_v43 = vpop.eup %790 }
 0xa2e   :  { %v474_v44 = vmul.f32 %v791_v43, %v472_v42  ;;  %vm479_vm11 = vweird.f32 %v791_v43 }
 0xa2f   :  { %vm480_vm13 = vmor %vm478_vm12, %vm479_vm11  ;;  %vm710_vm12 = vcmask 257024  }
 0xa30   :  { %v475_v45 = vsub.f32 1.0, %v474_v44 }
 0xa32   :  { %v476_v46 = vmul.f32 %v791_v43, %v475_v45 }
 0xa34   :  { %v477_v47 = vadd.f32 %v791_v43, %v476_v46 }
 0xa36   :  { %v481_v50 = vsel %vm480_vm13, %v791_v43, %v477_v47 }
 0xa37   :  { %v486_v53 = vsel %vm483_vm14, %v485_v51, %v481_v50 }
 0xa38   :  { %v500_v59 = vsub.f32 1.0, %v486_v53  ;;  %v506_v61 = vmul.f32 %v486_v53, %v441_v34 }
 0xa76   :  { %v491_v52 = vpop.permute.xlu2 %490 }
 0xa77   :  { %v493_v54 = vmul.f32 %v491_v52, %v486_v53 }
 0xa79   :  { %495 = vrot.lane.b32.xlu0 %v493_v54, %s839_s24 }
 0xaeb   :  { %v496_v55 = vpop.permute.xlu0 %495 }
 0xaec   :  { %v498_v56 = vadd.f32 %v496_v55, %v442_v38 }
 0xaee   :  { %792 = vtanh.f32 %v498_v56 }
 0xaf4   :  { %v793_v57 = vpop.eup %792 }
 0xaf5   :  { %502 = vrot.lane.b32.xlu1 %v793_v57, %s841_s2 }
 0xafd   :  { %40 = vperm.xlu1 %761, %v27_v58  }
 0xb67   :  { %v503_v60 = vpop.permute.xlu1 %502 }
 0xb68   :  { %v505_v62 = vmul.f32 %v503_v60, %v500_v59 }
 0xb6a   :  { %v507_v63 = vadd.f32 %v506_v61, %v505_v62 }
 0xb6c   :  { %510 = vrot.lane.b32.xlu2 %v507_v63, %s841_s2 }
 0xb6f   :  { %v41_v0 = vpop.permute.xlu1 %40 }
 0xb70   :  { %vm45_vm15 = vcmp.eq.s32.totalorder %v41_v0, %v956_v19 }
 0xb71   :  { %v731_v1 = vsel %vm45_vm15, 1.0, %v840_v17  ;;  %v508_v17 = vld [vmem:[#allocation2 + $0x14] sm:$0xf] }
 0xb72   :  { %735 = vmatmul.msk.f32.gmra.mxu0 %vm61_vm0, %v731_v1 }
 0xbc6   :  { %v511_v2 = vpop.permute.xlu2 %510 }
 0xbc7   :  { %749 = vmatmul.msk.f32.vlgmr.msra.gmra.mxu3 %vm111_vm2, %v511_v2 }
 0xbef   :  { %v100_v3 = vpop.f32.mrf.mxu0 }
 0xbf0   :  { %739 = vmatmul.msk.f32.gmra.mxu1 %vm111_vm2, %v100_v3 }
 0xc4a   :  { %v531_v4 = vpop.f32.mrf.mxu3 }
 0xc4b   :  { %v554_v5 = vadd.f32 %v531_v4, %v964_v23  ;;  %v534_v19 = vadd.f32 %v531_v4, %v508_v17 }
 0xc4d   :  { %556 = vrot.lane.b32.xlu0 %v554_v5, %s839_s24  ;;  %v750_v13 = vmul.f32 -1.442695, %v534_v19 }
 0xc4f   :  { %794 = vpow2.f32 %v750_v13 }
 0xc55   :  { %v795_v16 = vpop.eup %794 }
 0xc56   :  { %v538_v6 = vadd.f32 1.0, %v795_v16 }
 0xc58   :  { %796 = vrcp.f32 %v538_v6  ;;  %v550_v15 = vand.u32 2147483648, %v538_v6  ;;  %vm544_vm1 = vweird.f32 %v538_v6 }
 0xc5a   :  { %v551_v20 = vor.u32 1.1754944e-38, %v550_v15 }
 0xc5e   :  { %v797_v7 = vpop.eup %796 }
 0xc5f   :  { %v540_v8 = vmul.f32 %v797_v7, %v538_v6  ;;  %vm545_vm0 = vweird.f32 %v797_v7 }
 0xc60   :  { %vm546_vm5 = vmor %vm544_vm1, %vm545_vm0 }
 0xc61   :  { %v541_v11 = vsub.f32 1.0, %v540_v8 }
 0xc63   :  { %v542_v12 = vmul.f32 %v797_v7, %v541_v11 }
 0xc65   :  { %v543_v14 = vadd.f32 %v797_v7, %v542_v12 }
 0xc67   :  { %v547_v18 = vsel %vm546_vm5, %v797_v7, %v543_v14 }
 0xc6d   :  { %v150_v9 = vpop.f32.mrf.mxu1 }
 0xc6e   :  { %v151_v10 = vadd.f32 %v972_v27, %v150_v9  ;;  %v548_v27 = vand.u32 2147483647, %v538_v6 }
 0xc70   :  { %167 = vst.msk [vmem:[#allocation2 + $0x18] sm:$0xf] %vm153_vm3, %v151_v10  ;;  %vm549_vm3 = vcmp.eq.f32.partialorder %v548_v27, 8.507059e+37 }
 0xc71   :  { %169 = vst.msk [vmem:[#allocation2 + $0x18] sm:$0xf0] %vm156_vm4, %v151_v10  ;;  %v552_v22 = vsel %vm549_vm3, %v551_v20, %v547_v18 }
 0xc72   :  { %v566_v29 = vsub.f32 1.0, %v552_v22  ;;  %v572_v31 = vmul.f32 %v552_v22, %v507_v63 }
 0xc77   :  { %v574_v37 = vld [vmem:[#allocation2 + $0x18] sm:$0xf] }
 0xc78   :  { %v640_v1 = vld [vmem:[#allocation2 + $0x1c] sm:$0xf] }
 0xcbf   :  { %v557_v21 = vpop.permute.xlu0 %556 }
 0xcc0   :  { %v559_v24 = vmul.f32 %v557_v21, %v552_v22 }
 0xcc2   :  { %561 = vrot.lane.b32.xlu2 %v559_v24, %s839_s24 }
 0xd1c   :  { %v562_v25 = vpop.permute.xlu2 %561 }
 0xd1d   :  { %v564_v26 = vadd.f32 %v562_v25, %v508_v17 }
 0xd1f   :  { %798 = vtanh.f32 %v564_v26 }
 0xd25   :  { %v799_v28 = vpop.eup %798 }
 0xd26   :  { %568 = vrot.lane.b32.xlu0 %v799_v28, %s841_s2 }
 0xd98   :  { %v569_v30 = vpop.permute.xlu0 %568 }
 0xd99   :  { %v571_v32 = vmul.f32 %v569_v30, %v566_v29 }
 0xd9b   :  { %v573_v33 = vadd.f32 %v572_v31, %v571_v32 }
 0xd9d   :  { %576 = vrot.lane.b32.xlu1 %v573_v33, %s841_s2 }
 0xe0f   :  { %v577_v34 = vpop.permute.xlu1 %576 }
 0xe10   :  { %751 = vmatmul.msk.f32.vlgmr.msrb.gmra.mxu2 %vm111_vm2, %v577_v34 }
 0xe93   :  { %v597_v35 = vpop.f32.mrf.mxu2 }
 0xe94   :  { %v620_v36 = vadd.f32 %v597_v35, %v964_v23  ;;  %v600_v38 = vadd.f32 %v597_v35, %v574_v37 }
 0xe96   :  { %622 = vrot.lane.b32.xlu2 %v620_v36, %s839_s24  ;;  %v752_v39 = vmul.f32 -1.442695, %v600_v38 }
 0xe98   :  { %800 = vpow2.f32 %v752_v39 }
 0xe9e   :  { %v801_v40 = vpop.eup %800 }
 0xe9f   :  { %v604_v41 = vadd.f32 1.0, %v801_v40 }
 0xea1   :  { %802 = vrcp.f32 %v604_v41  ;;  %v616_v47 = vand.u32 2147483648, %v604_v41  ;;  %vm610_vm6 = vweird.f32 %v604_v41  ;;  %v614_v48 = vand.u32 2147483647, %v604_v41 }
 0xea3   :  { %v617_v50 = vor.u32 1.1754944e-38, %v616_v47  ;;  %vm615_vm8 = vcmp.eq.f32.partialorder %v614_v48, 8.507059e+37 }
 0xea7   :  { %v803_v42 = vpop.eup %802 }
 0xea8   :  { %v606_v43 = vmul.f32 %v803_v42, %v604_v41  ;;  %vm611_vm4 = vweird.f32 %v803_v42 }
 0xea9   :  { %vm612_vm7 = vmor %vm610_vm6, %vm611_vm4 }
 0xeaa   :  { %v607_v44 = vsub.f32 1.0, %v606_v43 }
 0xeac   :  { %v608_v45 = vmul.f32 %v803_v42, %v607_v44 }
 0xeae   :  { %v609_v46 = vadd.f32 %v803_v42, %v608_v45 }
 0xeb0   :  { %v613_v49 = vsel %vm612_vm7, %v803_v42, %v609_v46 }
 0xeb1   :  { %v618_v52 = vsel %vm615_vm8, %v617_v50, %v613_v49 }
 0xeb2   :  { %v632_v57 = vsub.f32 1.0, %v618_v52  ;;  %v638_v59 = vmul.f32 %v618_v52, %v573_v33 }
 0xef0   :  { %v623_v51 = vpop.permute.xlu2 %622 }
 0xef1   :  { %v625_v53 = vmul.f32 %v623_v51, %v618_v52 }
 0xef3   :  { %627 = vrot.lane.b32.xlu0 %v625_v53, %s839_s24 }
 0xf65   :  { %v628_v54 = vpop.permute.xlu0 %627 }
 0xf66   :  { %v630_v55 = vadd.f32 %v628_v54, %v574_v37 }
 0xf68   :  { %804 = vtanh.f32 %v630_v55 }
 0xf6e   :  { %v805_v56 = vpop.eup %804 }
 0xf6f   :  { %634 = vrot.lane.b32.xlu1 %v805_v56, %s841_s2 }
 0xfe1   :  { %v635_v58 = vpop.permute.xlu1 %634 }
 0xfe2   :  { %v637_v60 = vmul.f32 %v635_v58, %v632_v57 }
 0xfe4   :  { %v639_v61 = vadd.f32 %v638_v59, %v637_v60 }
 0xfe6   :  { %642 = vrot.lane.b32.xlu2 %v639_v61, %s841_s2 }
0x1040   :  { %v643_v62 = vpop.permute.xlu2 %642 }
0x1041   :  { %753 = vmatmul.msk.f32.vlgmr.msrb.gmra.mxu3 %vm111_vm2, %v643_v62 }
0x10c4   :  { %v663_v63 = vpop.f32.mrf.mxu3 }
0x10c5   :  { %v686_v0 = vadd.f32 %v663_v63, %v964_v23  ;;  %v666_v2 = vadd.f32 %v663_v63, %v640_v1 }
0x10c7   :  { %688 = vrot.lane.b32.xlu0 %v686_v0, %s839_s24  ;;  %v754_v3 = vmul.f32 -1.442695, %v666_v2 }
0x10c9   :  { %806 = vpow2.f32 %v754_v3 }
0x10cf   :  { %v807_v4 = vpop.eup %806 }
0x10d0   :  { %v670_v5 = vadd.f32 1.0, %v807_v4 }
0x10d2   :  { %808 = vrcp.f32 %v670_v5  ;;  %v682_v16 = vand.u32 2147483648, %v670_v5  ;;  %vm676_vm2 = vweird.f32 %v670_v5  ;;  %v680_v6 = vand.u32 2147483647, %v670_v5 }
0x10d4   :  { %v683_v7 = vor.u32 1.1754944e-38, %v682_v16  ;;  %vm681_vm11 = vcmp.eq.f32.partialorder %v680_v6, 8.507059e+37 }
0x10d8   :  { %v809_v9 = vpop.eup %808 }
0x10d9   :  { %v672_v10 = vmul.f32 %v809_v9, %v670_v5  ;;  %vm677_vm9 = vweird.f32 %v809_v9 }
0x10da   :  { %vm678_vm10 = vmor %vm676_vm2, %vm677_vm9 }
0x10db   :  { %v673_v17 = vsub.f32 1.0, %v672_v10 }
0x10dd   :  { %v674_v19 = vmul.f32 %v809_v9, %v673_v17 }
0x10df   :  { %v675_v13 = vadd.f32 %v809_v9, %v674_v19 }
0x10e1   :  { %v679_v23 = vsel %vm678_vm10, %v809_v9, %v675_v13 }
0x10e2   :  { %v684_v11 = vsel %vm681_vm11, %v683_v7, %v679_v23 }
0x10e3   :  { %v698_v18 = vsub.f32 1.0, %v684_v11  ;;  %v704_v21 = vmul.f32 %v684_v11, %v639_v61 }
0x1139   :  { %v689_v8 = vpop.permute.xlu0 %688 }
0x113a   :  { %v691_v12 = vmul.f32 %v689_v8, %v684_v11 }
0x113c   :  { %693 = vrot.lane.b32.xlu1 %v691_v12, %s839_s24 }
0x11ae   :  { %v694_v14 = vpop.permute.xlu1 %693 }
0x11af   :  { %v696_v15 = vadd.f32 %v694_v14, %v640_v1 }
0x11b1   :  { %810 = vtanh.f32 %v696_v15 }
0x11b7   :  { %v811_v27 = vpop.eup %810 }
0x11b8   :  { %700 = vrot.lane.b32.xlu2 %v811_v27, %s841_s2 }
0x1212   :  { %v701_v20 = vpop.permute.xlu2 %700 }
0x1213   :  { %v703_v22 = vmul.f32 %v701_v20, %v698_v18 }
0x1215   :  { %v705_v24 = vadd.f32 %v704_v21, %v703_v22 }
0x1217   :  { %707 = vrot.lane.b32.xlu0 %v705_v24, %s841_s2 }
0x1289   :  { %v708_v25 = vpop.permute.xlu0 %707 }
0x128a   :  { %711 = vst.msk [vmem:[#allocation3] sm:$0xf] %vm710_vm12, %v708_v25 }
0x128b   :  { %722 = dma.vmem_to_hbm [thread:$0]  %s718_s12, 64, %s720_s15, [#allocation4]  }
0x128c   :  { %836 = dma.done.wait [#allocation4], 64  }
0x128d   :  { %837 = vsyncadd [#allocation4], 4294967232 }
0x128e   :  { %727 = vsyncpa [#allocation4], 1 }

</bundles_post_ra>
